<compile_context>
chip_gen: v6e
topology: v6e:2x2x1
jax: 0.10.0
libtpu: 0.0.40
codegen_flags: <defaults>
</compile_context>

<pallas_src>
from functools import lru_cache

import numpy as np
import jax
import jax.numpy as jnp
from jax.experimental import pallas as pl
from jax.experimental.pallas import tpu as pltpu


@lru_cache(maxsize=None)
def _interp_matrix(out_size, in_size, align_corners=True):
    """1-D bilinear interpolation matrix (out_size, in_size), PyTorch semantics. Cached per shape."""
    m = np.zeros((out_size, in_size), dtype=np.float32)
    for i in range(out_size):
        if align_corners:
            src = i * (in_size - 1) / (out_size - 1) if out_size > 1 else 0.0
        else:
            src = max(0.0, (i + 0.5) * in_size / out_size - 0.5)
        lo = min(int(np.floor(src)), in_size - 1)
        hi = min(lo + 1, in_size - 1)
        frac = src - lo
        m[i, lo] += 1.0 - frac
        m[i, hi] += frac
    return m


def up_kernel(x_ref, bt_ref, m_ref, o_ref):
    # x_ref : (N*CH, W)    CH = (Cin+1)*H, rows ordered n-major, then channel, then h
    # bt_ref: (W, Wout)    width bilinear-interp matrix, transposed (B_w^T)
    # m_ref : (OH, CH)     OH = Cout*Hout;  M = kron([weight | bias], A_h)
    # o_ref : (N, OH, Wout)
    n = o_ref.shape[0]
    ch = m_ref.shape[1]

    # MXU matmul #1: width upsample for all batches/channels/rows at once.
    t = jnp.dot(x_ref[...], bt_ref[...], preferred_element_type=jnp.float32)  # (N*CH, Wout)

    # MXU matmul #2: fused 1x1 conv + bias + height upsample, one dot per batch element.
    # Static unroll (N is small); for large N put N on a "parallel" grid axis instead.
    for i in range(n):
        o_ref[i] = jnp.dot(
            m_ref[...], t[i * ch:(i + 1) * ch, :],
            preferred_element_type=jnp.float32,
        ).astype(o_ref.dtype)


def up_forward(x, weight, bias=None, *, align_corners=True):
    """x: (N, Cin, H, W) float32 NCHW -> (N, Cout, 2H, 2W).  weight: (Cout, Cin), bias: (Cout,)."""
    n, cin, h, w = x.shape
    cout = weight.shape[0]
    hout, wout = 2 * h, 2 * w

    a_np = _interp_matrix(hout, h, align_corners)          # (Hout, H)
    b_np = _interp_matrix(wout, w, align_corners)          # (Wout, W)
    a_mat = jnp.asarray(a_np)                              # (Hout, H)
    bt = jnp.asarray(b_np.T)                               # (W, Wout)

    # Fold the conv bias into the channel matmul via an extra all-ones input channel
    # (interp rows sum to 1, so the ones channel stays 1 through the upsample).
    if bias is not None:
        w_aug = jnp.concatenate([weight, bias[:, None]], axis=1)        # (Cout, Cin+1)
        x_aug = jnp.concatenate([x, jnp.ones((n, 1, h, w), x.dtype)], axis=1)
        cin1 = cin + 1
    else:
        w_aug, x_aug, cin1 = weight, x, cin

    ch = cin1 * h
    oh = cout * hout

    # Combined (1x1 conv ⊗ height-upsample) matrix: M[(o,i),(c,hh)] = w_aug[o,c] * A[i,hh]
    m = jnp.kron(w_aug.astype(jnp.float32), a_mat)          # (Cout*Hout, (Cin+1)*H)

    # Row-major flatten keeps rows ordered (n, c, hh) with W as the lane dim.
    x2 = x_aug.reshape(n * ch, w).astype(jnp.float32)        # (N*CH, W)

    out3 = pl.pallas_call(
        up_kernel,
        out_shape=jax.ShapeDtypeStruct((n, oh, wout), jnp.float32),
        grid_spec=pltpu.PrefetchScalarGridSpec(
            num_scalar_prefetch=0,
            grid=(1,),                                       # single fused step: no per-batch grid overhead
            in_specs=[
                pl.BlockSpec((n * ch, w), lambda i: (0, 0)),
                pl.BlockSpec((w, wout), lambda i: (0, 0)),
                pl.BlockSpec((oh, ch), lambda i: (0, 0)),
            ],
            out_specs=pl.BlockSpec((n, oh, wout), lambda i: (0, 0, 0)),
        ),
        compiler_params=pltpu.CompilerParams(
            dimension_semantics=("arbitrary",),
        ),
    )(x2, bt, m)

    return out3.reshape(n, cout, hout, wout).astype(x.dtype)


def up_reference(x, weight, bias, *, align_corners=True):
    """Plain-JAX reference (conv then separable bilinear upsample) for self-check."""
    n, cin, h, w = x.shape
    hout, wout = 2 * h, 2 * w
    a_mat = jnp.asarray(_interp_matrix(hout, h, align_corners))
    b_mat = jnp.asarray(_interp_matrix(wout, w, align_corners))
    y = jnp.einsum('oc,nchw->nohw', weight, x) + bias[None, :, None, None]
    t = jnp.einsum('nchw,pw->nchp', y, b_mat)
    return jnp.einsum('oh,nchp->ncop', a_mat, t)


if __name__ == "__main__":
    key = jax.random.PRNGKey(0)
    k_x, k_w, k_b = jax.random.split(key, 3)

    # Module config: in_channels=4, chan_factor=2 -> out_channels=2, bias=True (=> align_corners=True)
    N, Cin, H, W = 2, 4, 16, 16
    Cout = Cin // 2

    x = jax.random.normal(k_x, (N, Cin, H, W), dtype=jnp.float32)
    weight = jax.random.normal(k_w, (Cout, Cin), dtype=jnp.float32) * 0.1   # Conv2d 1x1 weight squeezed
    bias = jax.random.normal(k_b, (Cout,), dtype=jnp.float32) * 0.1

    out = jax.block_until_ready(up_forward(x, weight, bias, align_corners=True))
    ref = up_reference(x, weight, bias, align_corners=True)

    assert out.shape == (N, Cout, 2 * H, 2 * W), out.shape
    np.testing.assert_allclose(np.asarray(out), np.asarray(ref), rtol=1e-5, atol=1e-5)

    print("KERNEL_OK")
</pallas_src>

<mosaic_0001>
module attributes {stable_mosaic.version = 11 : i64} {
  func.func @up_kernel(%arg0: i32, %arg1: memref<160x16xf32, #tpu.memory_space<vmem>>, %arg2: memref<16x32xf32, #tpu.memory_space<vmem>>, %arg3: memref<64x80xf32, #tpu.memory_space<vmem>>, %arg4: memref<2x64x32xf32, #tpu.memory_space<vmem>>) attributes {dimension_semantics = [#tpu.dimension_semantics<arbitrary>], iteration_bounds = array<i64: 1>, scalar_prefetch = 0 : i64, scratch_operands = 0 : i64, tpu.core_type = #tpu.core_type<tc>, window_params = [{pipeline_mode = #tpu.pipeline_mode<synchronous>, transform_indices = @transform_0, window_bounds = array<i64: 160, 16>}, {pipeline_mode = #tpu.pipeline_mode<synchronous>, transform_indices = @transform_1, window_bounds = array<i64: 16, 32>}, {pipeline_mode = #tpu.pipeline_mode<synchronous>, transform_indices = @transform_2, window_bounds = array<i64: 64, 80>}, {pipeline_mode = #tpu.pipeline_mode<synchronous>, transform_indices = @transform_3, window_bounds = array<i64: 2, 64, 32>}]} {
    %c0 = arith.constant 0 : index
    %c0_0 = arith.constant 0 : index
    %0 = vector.load %arg1[%c0, %c0_0] : memref<160x16xf32, #tpu.memory_space<vmem>>, vector<160x16xf32>
    %c0_1 = arith.constant 0 : index
    %c0_2 = arith.constant 0 : index
    %1 = vector.load %arg2[%c0_1, %c0_2] : memref<16x32xf32, #tpu.memory_space<vmem>>, vector<16x32xf32>
    %cst = arith.constant dense<0.000000e+00> : vector<160x32xf32>
    %2 = tpu.matmul %0, %1, %cst {dimension_numbers = #tpu.dot_dimension_numbers<[1], [0], [0], [1], [0, 0, 1, 1], [], []>} : vector<160x16xf32>, vector<16x32xf32>, vector<160x32xf32> -> vector<160x32xf32>
    %c0_3 = arith.constant 0 : index
    %c0_4 = arith.constant 0 : index
    %3 = vector.load %arg3[%c0_3, %c0_4] : memref<64x80xf32, #tpu.memory_space<vmem>>, vector<64x80xf32>
    %4 = vector.extract_strided_slice %2 {offsets = [0, 0], sizes = [80, 32], strides = [1, 1]} : vector<160x32xf32> to vector<80x32xf32>
    %cst_5 = arith.constant dense<0.000000e+00> : vector<64x32xf32>
    %5 = tpu.matmul %3, %4, %cst_5 {dimension_numbers = #tpu.dot_dimension_numbers<[1], [0], [0], [1], [0, 0, 1, 1], [], []>} : vector<64x80xf32>, vector<80x32xf32>, vector<64x32xf32> -> vector<64x32xf32>
    %c0_6 = arith.constant 0 : index
    %c0_7 = arith.constant 0 : index
    %c0_8 = arith.constant 0 : index
    %6 = vector.load %arg4[%c0_6, %c0_7, %c0_8] : memref<2x64x32xf32, #tpu.memory_space<vmem>>, vector<1x64x32xf32>
    %7 = vector.shape_cast %6 : vector<1x64x32xf32> to vector<64x32xf32>
    %8 = vector.shape_cast %5 : vector<64x32xf32> to vector<1x64x32xf32>
    tpu.vector_store %arg4[%c0_6, %c0_7, %c0_8], %8 {strides = array<i32>} : memref<2x64x32xf32, #tpu.memory_space<vmem>>, vector<1x64x32xf32>,
    %c0_9 = arith.constant 0 : index
    %c0_10 = arith.constant 0 : index
    %9 = vector.load %arg3[%c0_9, %c0_10] : memref<64x80xf32, #tpu.memory_space<vmem>>, vector<64x80xf32>
    %10 = vector.extract_strided_slice %2 {offsets = [80, 0], sizes = [80, 32], strides = [1, 1]} : vector<160x32xf32> to vector<80x32xf32>
    %cst_11 = arith.constant dense<0.000000e+00> : vector<64x32xf32>
    %11 = tpu.matmul %9, %10, %cst_11 {dimension_numbers = #tpu.dot_dimension_numbers<[1], [0], [0], [1], [0, 0, 1, 1], [], []>} : vector<64x80xf32>, vector<80x32xf32>, vector<64x32xf32> -> vector<64x32xf32>
    %c1 = arith.constant 1 : index
    %c0_12 = arith.constant 0 : index
    %c0_13 = arith.constant 0 : index
    %12 = vector.load %arg4[%c1, %c0_12, %c0_13] : memref<2x64x32xf32, #tpu.memory_space<vmem>>, vector<1x64x32xf32>
    %13 = vector.shape_cast %12 : vector<1x64x32xf32> to vector<64x32xf32>
    %14 = vector.shape_cast %11 : vector<64x32xf32> to vector<1x64x32xf32>
    tpu.vector_store %arg4[%c1, %c0_12, %c0_13], %14 {strides = array<i32>} : memref<2x64x32xf32, #tpu.memory_space<vmem>>, vector<1x64x32xf32>,
    return
  }
  func.func @transform_0(%arg0: i32) -> (i32, i32) {
    %c0_i32 = arith.constant 0 : i32
    %c0_i32_0 = arith.constant 0 : i32
    %c0_i32_1 = arith.constant 0 : i32
    return %c0_i32, %c0_i32_0 : i32, i32
  }
  func.func @transform_1(%arg0: i32) -> (i32, i32) {
    %c0_i32 = arith.constant 0 : i32
    %c0_i32_0 = arith.constant 0 : i32
    %c0_i32_1 = arith.constant 0 : i32
    return %c0_i32, %c0_i32_0 : i32, i32
  }
  func.func @transform_2(%arg0: i32) -> (i32, i32) {
    %c0_i32 = arith.constant 0 : i32
    %c0_i32_0 = arith.constant 0 : i32
    %c0_i32_1 = arith.constant 0 : i32
    return %c0_i32, %c0_i32_0 : i32, i32
  }
  func.func @transform_3(%arg0: i32) -> (i32, i32, i32) {
    %c0_i32 = arith.constant 0 : i32
    %c0_i32_0 = arith.constant 0 : i32
    %c0_i32_1 = arith.constant 0 : i32
    %c0_i32_2 = arith.constant 0 : i32
    return %c0_i32, %c0_i32_0, %c0_i32_1 : i32, i32, i32
  }
}

</mosaic_0001>

<bundles_post_ra>
// kernel: tpu_custom_call.1
= control target key start
LH: loop header
LB: loop body
LE: loop exit
PB: predicated region body
PF: predicated region fallthrough
CT: control target
= control target key end

     0   :  { %vm36_vm0 = vcmask 130048   ;;  %vm270_vm1 = vcmask 654336   ;;  %vm400_vm2 = vcmask 261120   ;;  %s1001_s1 = inlined_call_operand.vmem [shape: f32[16,32], index: 1, kind: input, shape index: {}]   ;;  %s1002_s0 = inlined_call_operand.vmem [shape: f32[160,16], index: 0, kind: input, shape index: {}]   ;;  %s1003_s2 = inlined_call_operand.vmem [shape: f32[64,80], index: 2, kind: input, shape index: {}]   ;;  %s1004_s3 = inlined_call_operand.vmem [shape: f32[2,64,32], index: 3, kind: output, shape index: {}]  }
   0x1   :  { %v35_v0 = vld [vmem:[%s1001_s1 + $0x8] sm:$0xff]  ;;  %v34_v1 = vld [vmem:[%s1001_s1] sm:$0xff]  ;;  %v16_v4 = vld [vmem:[%s1002_s0 + $0x10] sm:$0xff] }
   0x2   :  { %v14_v2 = vld [vmem:[%s1002_s0] sm:$0xff]  ;;  %661 = vmatprep.subr.mxu0 %v35_v0  ;;  %v15_v3 = vld [vmem:[%s1002_s0 + $0x8] sm:$0xff]  ;;  %v17_v5 = vld [vmem:[%s1002_s0 + $0x18] sm:$0xff] }
   0x3   :  { %665 = vmatprep.mubr.msk.f32.mxu0 %vm36_vm0, %v14_v2  ;;  %662 = vmatpush3.msra.mxu0 %v35_v0  ;;  %v18_v6 = vld [vmem:[%s1002_s0 + $0x20] sm:$0xff]  ;;  %v19_v7 = vld [vmem:[%s1002_s0 + $0x28] sm:$0xff]  ;;  %v20_v8 = vld [vmem:[%s1002_s0 + $0x30] sm:$0xff] }
   0x4   :  { %663 = vmatprep.subr.mxu0 %v34_v1  ;;  %v21_v9 = vld [vmem:[%s1002_s0 + $0x38] sm:$0xff]  ;;  %v22_v10 = vld [vmem:[%s1002_s0 + $0x40] sm:$0xff]  ;;  %v23_v11 = vld [vmem:[%s1002_s0 + $0x48] sm:$0xff] }
   0x5   :  { %664 = vmatpush3.msra.mxu0 %v34_v1  ;;  %v24_v12 = vld [vmem:[%s1002_s0 + $0x50] sm:$0xff]  ;;  %v25_v13 = vld [vmem:[%s1002_s0 + $0x58] sm:$0xff]  ;;  %v26_v14 = vld [vmem:[%s1002_s0 + $0x60] sm:$0xff] }
   0x6   :  { %666 = vmatmul.mubr.msk.f32.vlgmr.msra.gmra.mxu0 %vm36_vm0, %v15_v3  ;;  %v27_v15 = vld [vmem:[%s1002_s0 + $0x68] sm:$0xff]  ;;  %v28_v16 = vld [vmem:[%s1002_s0 + $0x70] sm:$0xff]  ;;  %v29_v17 = vld [vmem:[%s1002_s0 + $0x78] sm:$0xff] }
   0x7   :  { %668 = vmatprep.mubr.msk.f32.mxu0 %vm36_vm0, %v16_v4  ;;  %v30_v18 = vld [vmem:[%s1002_s0 + $0x80] sm:$0xff]  ;;  %v31_v19 = vld [vmem:[%s1002_s0 + $0x88] sm:$0xff]  ;;  %v32_v20 = vld [vmem:[%s1002_s0 + $0x90] sm:$0xff] }
   0x8   :  { %v33_v21 = vld [vmem:[%s1002_s0 + $0x98] sm:$0xff]  ;;  %v262_v22 = vld [vmem:[%s1003_s2] sm:$0xff]  ;;  %v263_v41 = vld [vmem:[%s1003_s2 + $0x8] sm:$0xff] }
   0x9   :  { %715 = vmatprep.mubr.msk.f32.mxu1 %vm270_vm1, %v262_v22  ;;  %v264_v44 = vld [vmem:[%s1003_s2 + $0x10] sm:$0xff]  ;;  %v265_v45 = vld [vmem:[%s1003_s2 + $0x18] sm:$0xff]  ;;  %v266_v46 = vld [vmem:[%s1003_s2 + $0x20] sm:$0xff] }
   0xa   :  { %669 = vmatmul.mubr.msk.f32.gmra.mxu0 %vm36_vm0, %v17_v5  ;;  %v267_v47 = vld [vmem:[%s1003_s2 + $0x28] sm:$0xff]  ;;  %v268_v48 = vld [vmem:[%s1003_s2 + $0x30] sm:$0xff]  ;;  %v269_v49 = vld [vmem:[%s1003_s2 + $0x38] sm:$0xff] }
   0xb   :  { %671 = vmatprep.mubr.msk.f32.mxu0 %vm36_vm0, %v18_v6 }
   0xe   :  { %672 = vmatmul.mubr.msk.f32.gmra.mxu0 %vm36_vm0, %v19_v7 }
   0xf   :  { %674 = vmatprep.mubr.msk.f32.mxu0 %vm36_vm0, %v20_v8 }
  0x12   :  { %675 = vmatmul.mubr.msk.f32.gmra.mxu0 %vm36_vm0, %v21_v9 }
  0x13   :  { %677 = vmatprep.mubr.msk.f32.mxu0 %vm36_vm0, %v22_v10 }
  0x16   :  { %678 = vmatmul.mubr.msk.f32.gmra.mxu0 %vm36_vm0, %v23_v11 }
  0x17   :  { %680 = vmatprep.mubr.msk.f32.mxu0 %vm36_vm0, %v24_v12 }
  0x1a   :  { %681 = vmatmul.mubr.msk.f32.gmra.mxu0 %vm36_vm0, %v25_v13 }
  0x1b   :  { %683 = vmatprep.mubr.msk.f32.mxu0 %vm36_vm0, %v26_v14 }
  0x1e   :  { %684 = vmatmul.mubr.msk.f32.gmra.mxu0 %vm36_vm0, %v27_v15 }
  0x1f   :  { %686 = vmatprep.mubr.msk.f32.mxu0 %vm36_vm0, %v28_v16 }
  0x22   :  { %687 = vmatmul.mubr.msk.f32.gmra.mxu0 %vm36_vm0, %v29_v17 }
  0x23   :  { %689 = vmatprep.mubr.msk.f32.mxu0 %vm36_vm0, %v30_v18 }
  0x26   :  { %690 = vmatmul.mubr.msk.f32.gmra.mxu0 %vm36_vm0, %v31_v19 }
  0x27   :  { %692 = vmatprep.mubr.msk.f32.mxu0 %vm36_vm0, %v32_v20 }
  0x2a   :  { %693 = vmatmul.mubr.msk.f32.gmra.mxu0 %vm36_vm0, %v33_v21 }
  0x2b   :  { %747 = vmatprep.mubr.msk.f32.mxu0 %vm270_vm1, %v262_v22 }
  0xc6   :  { %v667_v23 = vpop.f32.mrf.mxu0 }
  0xc8   :  { %v163_v24 = vpop.f32.mrf.mxu0 }
  0xca   :  { %v670_v25 = vpop.f32.mrf.mxu0 }
  0xcc   :  { %v173_v26 = vpop.f32.mrf.mxu0 }
  0xce   :  { %v673_v27 = vpop.f32.mrf.mxu0 }
  0xd0   :  { %v183_v28 = vpop.f32.mrf.mxu0 }
  0xd2   :  { %v676_v29 = vpop.f32.mrf.mxu0 }
  0xd4   :  { %v193_v30 = vpop.f32.mrf.mxu0 }
  0xd6   :  { %v679_v31 = vpop.f32.mrf.mxu0 }
  0xd7   :  { %695 = vmatprep.subr.mxu1 %v679_v31 }
  0xd8   :  { %v203_v32 = vpop.f32.mrf.mxu0  ;;  %696 = vmatpush3.msra.mxu1 %v679_v31 }
  0xd9   :  { %697 = vmatprep.subr.mxu1 %v203_v32 }
  0xda   :  { %v890_v33 = vpop.f32.mrf.mxu0  ;;  %698 = vmatpush3.msra.mxu1 %v203_v32 }
  0xdb   :  { %699 = vmatprep.subr.mxu1 %v676_v29 }
  0xdc   :  { %v892_v34 = vpop.f32.mrf.mxu0  ;;  %700 = vmatpush3.msra.mxu1 %v676_v29 }
  0xdd   :  { %701 = vmatprep.subr.mxu1 %v193_v30 }
  0xde   :  { %v685_v35 = vpop.f32.mrf.mxu0  ;;  %702 = vmatpush3.msra.mxu1 %v193_v30 }
  0xdf   :  { %703 = vmatprep.subr.mxu1 %v673_v27 }
  0xe0   :  { %v223_v36 = vpop.f32.mrf.mxu0  ;;  %704 = vmatpush3.msra.mxu1 %v673_v27 }
  0xe1   :  { %705 = vmatprep.subr.mxu1 %v183_v28 }
  0xe2   :  { %v688_v37 = vpop.f32.mrf.mxu0  ;;  %706 = vmatpush3.msra.mxu1 %v183_v28 }
  0xe3   :  { %707 = vmatprep.subr.mxu1 %v670_v25 }
  0xe4   :  { %v233_v38 = vpop.f32.mrf.mxu0  ;;  %708 = vmatpush3.msra.mxu1 %v670_v25 }
  0xe5   :  { %709 = vmatprep.subr.mxu1 %v173_v26 }
  0xe6   :  { %v691_v39 = vpop.f32.mrf.mxu0  ;;  %710 = vmatpush3.msra.mxu1 %v173_v26 }
  0xe7   :  { %711 = vmatprep.subr.mxu1 %v667_v23 }
  0xe8   :  { %v243_v40 = vpop.f32.mrf.mxu0  ;;  %712 = vmatpush3.msra.mxu1 %v667_v23 }
  0xe9   :  { %713 = vmatprep.subr.mxu1 %v163_v24 }
  0xea   :  { %v694_v42 = vpop.f32.mrf.mxu0  ;;  %714 = vmatpush3.msra.mxu1 %v163_v24 }
  0xeb   :  { %727 = vmatprep.subr.mxu0 %v694_v42  ;;  %759 = vmatprep.subr.mxu1 %v694_v42 }
  0xec   :  { %v253_v43 = vpop.f32.mrf.mxu0  ;;  %716 = vmatmul.mubr.msk.f32.vlgmr.msra.gmra.mxu1 %vm270_vm1, %v263_v41  ;;  %728 = vmatpush3.msra.mxu0 %v694_v42 }
  0xed   :  { %769 = vmatpush3.msra.mxu1 %v694_v42  ;;  %729 = vmatprep.subr.mxu0 %v253_v43 }
  0xee   :  { %760 = vmatprep.subr.mxu1 %v253_v43  ;;  %730 = vmatpush3.msra.mxu0 %v253_v43 }
  0xef   :  { %770 = vmatpush3.msra.mxu1 %v253_v43  ;;  %731 = vmatprep.subr.mxu0 %v691_v39 }
  0xf0   :  { %761 = vmatprep.subr.mxu1 %v691_v39  ;;  %732 = vmatpush3.msra.mxu0 %v691_v39 }
  0xf1   :  { %771 = vmatpush3.msra.mxu1 %v691_v39  ;;  %733 = vmatprep.subr.mxu0 %v243_v40 }
  0xf2   :  { %762 = vmatprep.subr.mxu1 %v243_v40  ;;  %734 = vmatpush3.msra.mxu0 %v243_v40 }
  0xf3   :  { %772 = vmatpush3.msra.mxu1 %v243_v40  ;;  %735 = vmatprep.subr.mxu0 %v688_v37 }
  0xf4   :  { %763 = vmatprep.subr.mxu1 %v688_v37  ;;  %736 = vmatpush3.msra.mxu0 %v688_v37 }
  0xf5   :  { %773 = vmatpush3.msra.mxu1 %v688_v37  ;;  %737 = vmatprep.subr.mxu0 %v233_v38 }
  0xf6   :  { %764 = vmatprep.subr.mxu1 %v233_v38  ;;  %738 = vmatpush3.msra.mxu0 %v233_v38 }
  0xf7   :  { %774 = vmatpush3.msra.mxu1 %v233_v38  ;;  %739 = vmatprep.subr.mxu0 %v685_v35 }
  0xf8   :  { %765 = vmatprep.subr.mxu1 %v685_v35  ;;  %740 = vmatpush3.msra.mxu0 %v685_v35 }
  0xf9   :  { %775 = vmatpush3.msra.mxu1 %v685_v35  ;;  %741 = vmatprep.subr.mxu0 %v223_v36 }
  0xfa   :  { %766 = vmatprep.subr.mxu1 %v223_v36  ;;  %742 = vmatpush3.msra.mxu0 %v223_v36 }
  0xfb   :  { %776 = vmatpush3.msra.mxu1 %v223_v36  ;;  %743 = vmatprep.subr.mxu0 %v890_v33 }
  0xfc   :  { %767 = vmatprep.subr.mxu1 %v890_v33  ;;  %744 = vmatpush3.msra.mxu0 %v890_v33 }
  0xfd   :  { %777 = vmatpush3.msra.mxu1 %v890_v33  ;;  %718 = vmatprep.mubr.msk.f32.mxu1 %vm270_vm1, %v264_v44 }
  0xfe   :  { %745 = vmatprep.subr.mxu0 %v892_v34  ;;  %768 = vmatprep.subr.mxu1 %v892_v34 }
  0xff   :  { %719 = vmatmul.mubr.msk.f32.gmra.mxu1 %vm270_vm1, %v265_v45  ;;  %746 = vmatpush3.msra.mxu0 %v892_v34 }
 0x100   :  { %778 = vmatpush3.msra.mxu1 %v892_v34  ;;  %721 = vmatprep.mubr.msk.f32.mxu1 %vm270_vm1, %v266_v46 }
 0x101   :  { %748 = vmatmul.mubr.msk.f32.vlgmr.msra.gmra.mxu0 %vm270_vm1, %v263_v41 }
 0x103   :  { %722 = vmatmul.mubr.msk.f32.gmra.mxu1 %vm270_vm1, %v267_v47 }
 0x104   :  { %724 = vmatprep.mubr.msk.f32.mxu1 %vm270_vm1, %v268_v48 }
 0x107   :  { %725 = vmatmul.mubr.msk.f32.gmra.mxu1 %vm270_vm1, %v269_v49 }
 0x108   :  { %750 = vmatprep.mubr.msk.f32.mxu1 %vm270_vm1, %v264_v44 }
 0x10b   :  { %751 = vmatmul.mubr.msk.f32.vlgmr.msra.gmra.mxu1 %vm270_vm1, %v265_v45 }
 0x10c   :  { %753 = vmatprep.mubr.msk.f32.mxu1 %vm270_vm1, %v266_v46 }
 0x10f   :  { %754 = vmatmul.mubr.msk.f32.gmra.mxu1 %vm270_vm1, %v267_v47 }
 0x110   :  { %756 = vmatprep.mubr.msk.f32.mxu1 %vm270_vm1, %v268_v48 }
 0x113   :  { %757 = vmatmul.mubr.msk.f32.gmra.mxu1 %vm270_vm1, %v269_v49 }
 0x1ac   :  { %v717_v50 = vpop.f32.mrf.mxu1 }
 0x1ad   :  { %402 = vst.msk [vmem:[%s1004_s3 + $0x8] sm:$0xff] %vm400_vm2, %v717_v50 }
 0x1ae   :  { %v361_v51 = vpop.f32.mrf.mxu1 }
 0x1af   :  { %401 = vst.msk [vmem:[%s1004_s3] sm:$0xff] %vm400_vm2, %v361_v51 }
 0x1bf   :  { %v720_v52 = vpop.f32.mrf.mxu1 }
 0x1c0   :  { %404 = vst.msk [vmem:[%s1004_s3 + $0x18] sm:$0xff] %vm400_vm2, %v720_v52 }
 0x1c1   :  { %v371_v53 = vpop.f32.mrf.mxu1  ;;  %v749_v54 = vpop.f32.mrf.mxu0 }
 0x1c2   :  { %403 = vst.msk [vmem:[%s1004_s3 + $0x10] sm:$0xff] %vm400_vm2, %v371_v53  ;;  %596 = vst.msk [vmem:[%s1004_s3 + $0x48] sm:$0xff] %vm400_vm2, %v749_v54 }
 0x1c3   :  { %v723_v55 = vpop.f32.mrf.mxu1  ;;  %v507_v56 = vpop.f32.mrf.mxu0 }
 0x1c4   :  { %406 = vst.msk [vmem:[%s1004_s3 + $0x28] sm:$0xff] %vm400_vm2, %v723_v55  ;;  %595 = vst.msk [vmem:[%s1004_s3 + $0x40] sm:$0xff] %vm400_vm2, %v507_v56 }
 0x1c5   :  { %v381_v57 = vpop.f32.mrf.mxu1 }
 0x1c6   :  { %405 = vst.msk [vmem:[%s1004_s3 + $0x20] sm:$0xff] %vm400_vm2, %v381_v57 }
 0x1c7   :  { %v726_v58 = vpop.f32.mrf.mxu1 }
 0x1c8   :  { %408 = vst.msk [vmem:[%s1004_s3 + $0x38] sm:$0xff] %vm400_vm2, %v726_v58 }
 0x1c9   :  { %v391_v59 = vpop.f32.mrf.mxu1 }
 0x1ca   :  { %407 = vst.msk [vmem:[%s1004_s3 + $0x30] sm:$0xff] %vm400_vm2, %v391_v59 }
 0x1cb   :  { %v752_v60 = vpop.f32.mrf.mxu1 }
 0x1cc   :  { %598 = vst.msk [vmem:[%s1004_s3 + $0x58] sm:$0xff] %vm400_vm2, %v752_v60 }
 0x1cd   :  { %v517_v61 = vpop.f32.mrf.mxu1 }
 0x1ce   :  { %597 = vst.msk [vmem:[%s1004_s3 + $0x50] sm:$0xff] %vm400_vm2, %v517_v61 }
 0x1cf   :  { %v755_v62 = vpop.f32.mrf.mxu1 }
 0x1d0   :  { %600 = vst.msk [vmem:[%s1004_s3 + $0x68] sm:$0xff] %vm400_vm2, %v755_v62 }
 0x1d1   :  { %v527_v63 = vpop.f32.mrf.mxu1 }
 0x1d2   :  { %599 = vst.msk [vmem:[%s1004_s3 + $0x60] sm:$0xff] %vm400_vm2, %v527_v63 }
 0x1d3   :  { %v758_v0 = vpop.f32.mrf.mxu1 }
 0x1d4   :  { %602 = vst.msk [vmem:[%s1004_s3 + $0x78] sm:$0xff] %vm400_vm2, %v758_v0 }
 0x1d5   :  { %v537_v1 = vpop.f32.mrf.mxu1 }
 0x1d6   :  { %601 = vst.msk [vmem:[%s1004_s3 + $0x70] sm:$0xff] %vm400_vm2, %v537_v1 }

</bundles_post_ra>
